<compile_context>
chip_gen: v7x
topology: tpu7x:2x2x1
jax: 0.10.0
libtpu: 0.0.40
codegen_flags: <defaults>
</compile_context>

<pallas_src>
import jax
import jax.numpy as jnp
from jax import lax
from jax.experimental import pallas as pl
from jax.experimental.pallas import tpu as pltpu
import numpy as np


# ----------------------------- kernels ------------------------------------- #

def _mean_bn_kernel(v_ref, inv_ref, wl_ref, bl_ref, g_ref, b_ref, out_ref):
    # v_ref: (B, N, D) f32; inv_ref: (B, 1) f32
    # wl_ref: (D, E) bf16; bl_ref/g_ref/b_ref: (1, E) f32; out_ref: (B, E) f32
    feat = jnp.sum(v_ref[...], axis=1)                                 # (B, D) f32
    # row-scale (1/obj) commutes with the right-matmul -> apply after the MXU pass
    x = (jnp.dot(feat.astype(jnp.bfloat16), wl_ref[...],
                 preferred_element_type=jnp.float32)
         * inv_ref[...] + bl_ref[...])                                  # (B, E) f32
    # BatchNorm1d, training mode: biased batch statistics
    mu = jnp.mean(x, axis=0, keepdims=True)
    var = jnp.mean((x - mu) ** 2, axis=0, keepdims=True)
    out_ref[...] = g_ref[...] * (x - mu) * lax.rsqrt(var + 1e-5) + b_ref[...]


def _uncorr_bn_kernel(v_ref, inv_ref, wu_ref, bu_ref, wl_ref, bl_ref,
                      g_ref, b_ref, out_ref):
    # v_ref: (B, N, D) f32; inv_ref: (B, 1) f32
    # wu_ref: (D, 2*LR) bf16 (concat [U1 | U2]); bu_ref: (1, 2*LR) f32
    # wl_ref: (D, E) bf16; bl_ref/g_ref/b_ref: (1, E) f32; out_ref: (B, E) f32
    B, N, D = v_ref.shape
    LR2 = wu_ref.shape[1]
    LR = LR2 // 2

    V = v_ref[...]                                                      # (B, N, D) f32
    Vf = V.reshape(B * N, D).astype(jnp.bfloat16)                       # MXU feed (bf16)

    # Single fused projection: one (B*N, D) @ (D, 2LR) matmul + one bias/ReLU pass.
    RL = jnp.maximum(
        jnp.dot(Vf, wu_ref[...], preferred_element_type=jnp.float32) + bu_ref[...],
        0.0).reshape(B, N, LR2)                                         # (B, N, 2LR) f32
    R = RL[:, :, :LR]                                                   # U1 output
    L = RL[:, :, LR:]                                                   # U2 output

    # Collapsed aggregation:
    #   feat[b] = sum_n (L_b R_b^T V_b)[n]
    #           = sum_m ( (sum_n L_b[n,:]) . R_b[m,:] ) * V_b[m,:]
    lsum = jnp.sum(L, axis=1)                                           # (B, LR)
    wgt = jnp.sum(R * lsum[:, None, :], axis=-1)                        # (B, N)
    feat = jnp.sum(wgt[:, :, None] * V, axis=1)                         # (B, D) f32

    x = (jnp.dot(feat.astype(jnp.bfloat16), wl_ref[...],
                 preferred_element_type=jnp.float32)
         * inv_ref[...] + bl_ref[...])                                   # (B, E) f32
    mu = jnp.mean(x, axis=0, keepdims=True)
    var = jnp.mean((x - mu) ** 2, axis=0, keepdims=True)
    out_ref[...] = g_ref[...] * (x - mu) * lax.rsqrt(var + 1e-5) + b_ref[...]


# ----------------------------- wrapper -------------------------------------- #

def encoder_forward(Vmat, obj_nums, params, t_method="mean"):
    assert t_method in ("mean", "uncorr")
    B, N, D = Vmat.shape
    E = params["w_lin_t"].shape[1]

    # obj_nums must be > 0 (guaranteed by caller); pre-invert so the kernel multiplies.
    inv_obj = (1.0 / obj_nums.astype(jnp.float32)).reshape(B, 1)

    vmem = pl.BlockSpec(memory_space=pltpu.MemorySpace.VMEM)

    if t_method == "mean":
        kernel = _mean_bn_kernel
        operands = (Vmat, inv_obj,
                    params["w_lin_t"], params["b_lin"],
                    params["gamma"], params["beta"])
    else:
        kernel = _uncorr_bn_kernel
        operands = (Vmat, inv_obj,
                    params["w_u_cat_t"], params["b_u_cat"],
                    params["w_lin_t"], params["b_lin"],
                    params["gamma"], params["beta"])

    # One fused no-grid kernel: aggregation + Linear + BatchNorm, all resident in VMEM.
    # (Tiny shapes: whole problem fits VMEM with huge margin on v5e/v6e/v7x.)
    enc = pl.pallas_call(
        kernel,
        out_shape=jax.ShapeDtypeStruct((B, E), jnp.float32),
        in_specs=[vmem] * len(operands),
        out_specs=vmem,
    )(*operands)
    return enc


# ---------------------- deterministic parameter init ------------------------ #

def init_params(key, vdim, embed_size, LRdim):
    def lin_init(k, out_f, in_f):
        bound = 1.0 / np.sqrt(in_f)
        kw, kb = jax.random.split(k)
        w = jax.random.uniform(kw, (out_f, in_f), jnp.float32, -bound, bound)
        b = jax.random.uniform(kb, (1, out_f), jnp.float32, -bound, bound)
        return w, b

    ks = jax.random.split(key, 3)
    w_lin, b_lin = lin_init(ks[0], embed_size, vdim)
    v_u1, b_u1 = lin_init(ks[1], LRdim, vdim)
    v_u2, b_u2 = lin_init(ks[2], LRdim, vdim)

    # weight_norm reparameterization: w = g * v / ||v||_row  (at init g = ||v||  =>  w == v)
    def wn(v):
        nrm = jnp.linalg.norm(v, axis=1, keepdims=True)
        return nrm * v / nrm

    w_u1, w_u2 = wn(v_u1), wn(v_u2)

    return dict(
        # f32 originals (used by the pure-JAX reference)
        w_lin=w_lin, b_lin=b_lin,
        w_u1=w_u1, b_u1=b_u1,
        w_u2=w_u2, b_u2=b_u2,
        gamma=jnp.ones((1, embed_size), jnp.float32),   # BN affine defaults
        beta=jnp.zeros((1, embed_size), jnp.float32),
        # kernel-side: pre-transposed, U1/U2 concatenated, hot weights cast to bf16
        w_u_cat_t=jnp.concatenate([w_u1.T, w_u2.T], axis=1).astype(jnp.bfloat16),
        b_u_cat=jnp.concatenate([b_u1, b_u2], axis=1),
        w_lin_t=w_lin.T.astype(jnp.bfloat16),
    )


# ---------------------- pure-JAX reference (sanity) -------------------------- #

def _reference(Vmat, obj_nums, params, t_method):
    obj = obj_nums.astype(jnp.float32)[:, None]
    if t_method == "mean":
        feat = jnp.sum(Vmat, axis=1) / obj
    else:
        R = jax.nn.relu(jnp.einsum("bnv,lv->bnl", Vmat, params["w_u1"]) + params["b_u1"])
        L = jax.nn.relu(jnp.einsum("bnv,lv->bnl", Vmat, params["w_u2"]) + params["b_u2"])
        U = jnp.einsum("bnl,bml->bnm", L, R)
        Vu = jnp.einsum("bnm,bmv->bnv", U, Vmat)
        feat = jnp.sum(Vu, axis=1) / obj
    x = feat @ params["w_lin"].T + params["b_lin"]
    mu = jnp.mean(x, axis=0, keepdims=True)
    var = jnp.mean((x - mu) ** 2, axis=0, keepdims=True)
    return params["gamma"] * (x - mu) / jnp.sqrt(var + 1e-5) + params["beta"]


# ----------------------------------- main ------------------------------------ #

if __name__ == "__main__":
    # Small but hardware-aligned shapes: feature dims are multiples of 128 (lane-dense),
    # N = 8 matches the f32 sublane count (free (B,N,D)->(B*N,D) relayout).
    B, N_OBJ, VDIM, EMBED, LRDIM = 16, 8, 128, 128, 128

    key = jax.random.PRNGKey(0)
    kv, ko, kp = jax.random.split(key, 3)
    Vmat = jax.random.normal(kv, (B, N_OBJ, VDIM), jnp.float32)
    obj_nums = jax.random.randint(ko, (B,), 1, N_OBJ + 1).astype(jnp.int32)   # > 0 per sample
    params = init_params(kp, VDIM, EMBED, LRDIM)

    enc_mean = encoder_forward(Vmat, obj_nums, params, t_method="mean")
    enc_unc = encoder_forward(Vmat, obj_nums, params, t_method="uncorr")
    jax.block_until_ready((enc_mean, enc_unc))

    ref_mean = _reference(Vmat, obj_nums, params, "mean")
    ref_unc = _reference(Vmat, obj_nums, params, "uncorr")
    # MXU matmuls use bf16 inputs (f32 accumulation) -> compare at 5e-2.
    np.testing.assert_allclose(np.asarray(enc_mean), np.asarray(ref_mean),
                               rtol=5e-2, atol=5e-2)
    np.testing.assert_allclose(np.asarray(enc_unc), np.asarray(ref_unc),
                               rtol=5e-2, atol=5e-2)

    print("KERNEL_OK")
</pallas_src>

<mosaic_0001>
module attributes {stable_mosaic.version = 11 : i64} {
  func.func @_mean_bn_kernel(%arg0: memref<16x8x128xf32, #tpu.memory_space<vmem>>, %arg1: memref<16x1xf32, #tpu.memory_space<vmem>>, %arg2: memref<128x128xbf16, #tpu.memory_space<vmem>>, %arg3: memref<1x128xf32, #tpu.memory_space<vmem>>, %arg4: memref<1x128xf32, #tpu.memory_space<vmem>>, %arg5: memref<1x128xf32, #tpu.memory_space<vmem>>, %arg6: memref<16x128xf32, #tpu.memory_space<vmem>>) attributes {dimension_semantics = [], scalar_prefetch = 0 : i64, scratch_operands = 0 : i64, tpu.core_type = #tpu.core_type<tc>} {
    %c0 = arith.constant 0 : index
    %c0_0 = arith.constant 0 : index
    %c0_1 = arith.constant 0 : index
    %0 = vector.load %arg0[%c0, %c0_0, %c0_1] : memref<16x8x128xf32, #tpu.memory_space<vmem>>, vector<16x8x128xf32>
    %cst = arith.constant dense<0.000000e+00> : vector<16x128xf32>
    %1 = vector.multi_reduction <add>, %0, %cst [1] : vector<16x8x128xf32> to vector<16x128xf32>
    %2 = arith.truncf %1 : vector<16x128xf32> to vector<16x128xbf16>
    %c0_2 = arith.constant 0 : index
    %c0_3 = arith.constant 0 : index
    %3 = vector.load %arg2[%c0_2, %c0_3] : memref<128x128xbf16, #tpu.memory_space<vmem>>, vector<128x128xbf16>
    %cst_4 = arith.constant dense<0.000000e+00> : vector<16x128xf32>
    %4 = tpu.matmul %2, %3, %cst_4 {dimension_numbers = #tpu.dot_dimension_numbers<[1], [0], [0], [1], [0, 0, 1, 1], [], []>} : vector<16x128xbf16>, vector<128x128xbf16>, vector<16x128xf32> -> vector<16x128xf32>
    %c0_5 = arith.constant 0 : index
    %c0_6 = arith.constant 0 : index
    %5 = vector.load %arg1[%c0_5, %c0_6] : memref<16x1xf32, #tpu.memory_space<vmem>>, vector<16x1xf32>
    %6 = vector.broadcast %5 : vector<16x1xf32> to vector<16x128xf32>
    %7 = arith.mulf %4, %6 : vector<16x128xf32>
    %c0_7 = arith.constant 0 : index
    %c0_8 = arith.constant 0 : index
    %8 = vector.load %arg3[%c0_7, %c0_8] : memref<1x128xf32, #tpu.memory_space<vmem>>, vector<1x128xf32>
    %9 = vector.broadcast %8 : vector<1x128xf32> to vector<16x128xf32>
    %10 = arith.addf %7, %9 : vector<16x128xf32>
    %cst_9 = arith.constant dense<0.000000e+00> : vector<128xf32>
    %11 = vector.multi_reduction <add>, %10, %cst_9 [0] : vector<16x128xf32> to vector<128xf32>
    %12 = vector.shape_cast %11 : vector<128xf32> to vector<1x128xf32>
    %cst_10 = arith.constant 1.600000e+01 : f32
    %13 = vector.broadcast %cst_10 : f32 to vector<1x128xf32>
    %14 = arith.divf %12, %13 : vector<1x128xf32>
    %15 = vector.broadcast %14 : vector<1x128xf32> to vector<16x128xf32>
    %16 = arith.subf %10, %15 : vector<16x128xf32>
    %17 = arith.mulf %16, %16 : vector<16x128xf32>
    %cst_11 = arith.constant dense<0.000000e+00> : vector<128xf32>
    %18 = vector.multi_reduction <add>, %17, %cst_11 [0] : vector<16x128xf32> to vector<128xf32>
    %19 = vector.shape_cast %18 : vector<128xf32> to vector<1x128xf32>
    %cst_12 = arith.constant 1.600000e+01 : f32
    %20 = vector.broadcast %cst_12 : f32 to vector<1x128xf32>
    %21 = arith.divf %19, %20 : vector<1x128xf32>
    %c0_13 = arith.constant 0 : index
    %c0_14 = arith.constant 0 : index
    %22 = vector.load %arg4[%c0_13, %c0_14] : memref<1x128xf32, #tpu.memory_space<vmem>>, vector<1x128xf32>
    %23 = vector.broadcast %14 : vector<1x128xf32> to vector<16x128xf32>
    %24 = arith.subf %10, %23 : vector<16x128xf32>
    %25 = vector.broadcast %22 : vector<1x128xf32> to vector<16x128xf32>
    %26 = arith.mulf %25, %24 : vector<16x128xf32>
    %cst_15 = arith.constant 9.99999974E-6 : f32
    %27 = vector.broadcast %cst_15 : f32 to vector<1x128xf32>
    %28 = arith.addf %21, %27 : vector<1x128xf32>
    %29 = math.rsqrt %28 : vector<1x128xf32>
    %30 = vector.broadcast %29 : vector<1x128xf32> to vector<16x128xf32>
    %31 = arith.mulf %26, %30 : vector<16x128xf32>
    %c0_16 = arith.constant 0 : index
    %c0_17 = arith.constant 0 : index
    %32 = vector.load %arg5[%c0_16, %c0_17] : memref<1x128xf32, #tpu.memory_space<vmem>>, vector<1x128xf32>
    %33 = vector.broadcast %32 : vector<1x128xf32> to vector<16x128xf32>
    %34 = arith.addf %31, %33 : vector<16x128xf32>
    %c0_18 = arith.constant 0 : index
    %c0_19 = arith.constant 0 : index
    %35 = vector.load %arg6[%c0_18, %c0_19] : memref<16x128xf32, #tpu.memory_space<vmem>>, vector<16x128xf32>
    tpu.vector_store %arg6[%c0_18, %c0_19], %34 {strides = array<i32>} : memref<16x128xf32, #tpu.memory_space<vmem>>, vector<16x128xf32>,
    return
  }
}

</mosaic_0001>

<bundles_post_ra>
// kernel: tpu_custom_call.1
= control target key start
LH: loop header
LB: loop body
LE: loop exit
PB: predicated region body
PF: predicated region fallthrough
CT: control target
= control target key end

     0   :  { %11 = vsyncpa [#allocation3], 0  ;;  %s719_s0 = inlined_call_operand.hbm [shape: f32[16,8,128], index: 0, kind: input, shape index: {}]   ;;  %s720_s1 = inlined_call_operand.vmem [shape: f32[16,1], index: 1, kind: input, shape index: {}]   ;;  %s721_s2 = inlined_call_operand.hbm [shape: bf16[128,128], index: 2, kind: input, shape index: {}]   ;;  %s722_s3 = inlined_call_operand.vmem [shape: f32[1,128], index: 3, kind: input, shape index: {}]   ;;  %s723_s4 = inlined_call_operand.vmem [shape: f32[1,128], index: 4, kind: input, shape index: {}]   ;;  %s724_s5 = inlined_call_operand.vmem [shape: f32[1,128], index: 5, kind: input, shape index: {}]   ;;  %s725_s6 = inlined_call_operand.hbm [shape: f32[16,128], index: 6, kind: output, shape index: {}]  }
   0x1   :  { %12 = vsyncpa [#allocation6], 0 }
   0x2   :  { %13 = vsyncpa [#allocation4], 0  ;;  %s560_s21 = smov [#allocation2]   ;;  %s488_s25 = scalar_lea.hbm %s719_s0, 2048 }
   0x3   :  { %s19_s22 = sshll.u32 %s560_s21, 4  ;;  %p489_p0 = scmp.ne.s32.totalorder %s719_s0, %s488_s25  ;;  %s20_s22 = int_to_ptr.vmem [resolvable:$true] %s19_s22 }
   0x4   :  { %p492_p1 = scmp.lt.u32.totalorder %s488_s25, %s719_s0 }
   0x6   :  { %p494_p2 = pnand %p492_p1, %p489_p0 }
   0x8   :  { %497 = shalt.err (!%p494_p2)
}
   0x9   :  { %s498_s30 = scalar_lea.vmem %s20_s22, 2048  ;;  %p503_p4 = scmp.lt.s32.totalorder %s20_s22, %s20_s22 }
   0xa   :  { %p499_p3 = scmp.ne.s32.totalorder %s20_s22, %s498_s30  ;;  %p504_p5 = scmp.lt.s32.totalorder %s498_s30, %s498_s30 }
   0xc   :  { %p505_p6 = por %p504_p5, %p503_p4 }
   0xe   :  { %p506_p7 = pnand %p505_p6, %p499_p3 }
  0x10   :  { %509 = shalt.err (!%p506_p7)
}
  0x11   :  { %s561_s7 = smov 128   ;;  %s562_s8 = smov 8  }
  0x12   :  { %25 = dma.hbm_to_vmem [thread:$0]  %s719_s0, 2048, %s20_s22, [#allocation3], %s561_s7, %s561_s7, %s562_s8  }
  0x13   :  { %s563_s11 = smov [#allocation5]   ;;  %s510_s15 = scalar_lea.hbm %s721_s2, 1024 }
  0x14   :  { %s33_s12 = sshll.u32 %s563_s11, 4  ;;  %p511_p8 = scmp.ne.s32.totalorder %s721_s2, %s510_s15  ;;  %s34_s12 = int_to_ptr.vmem [resolvable:$true] %s33_s12 }
  0x15   :  { %p514_p9 = scmp.lt.u32.totalorder %s510_s15, %s721_s2 }
  0x17   :  { %p516_p10 = pnand %p514_p9, %p511_p8 }
  0x19   :  { %519 = shalt.err (!%p516_p10)
}
  0x1a   :  { %s520_s20 = scalar_lea.vmem %s34_s12, 1024  ;;  %p525_p12 = scmp.lt.s32.totalorder %s34_s12, %s34_s12 }
  0x1b   :  { %p521_p11 = scmp.ne.s32.totalorder %s34_s12, %s520_s20  ;;  %p526_p13 = scmp.lt.s32.totalorder %s520_s20, %s520_s20 }
  0x1d   :  { %p527_p0 = por %p526_p13, %p525_p12 }
  0x1f   :  { %p528_p1 = pnand %p527_p0, %p521_p11 }
  0x21   :  { %531 = shalt.err (!%p528_p1)
}
  0x22   :  { %s564_s0 = smov 64   ;;  %s565_s21 = smov 4  }
  0x23   :  { %39 = dma.hbm_to_vmem [thread:$0]  %s721_s2, 1024, %s34_s12, [#allocation6], %s564_s0, %s564_s0, %s565_s21  }
  0x24   :  { %554 = dma.done.wait [#allocation3], 2048  }
  0x25   :  { %555 = vsyncadd [#allocation3], 4294965248 }
  0x26   :  { %556 = dma.done.wait [#allocation6], 1024  }
  0x27   :  { %557 = vsyncadd [#allocation6], 4294966272  ;;  %v566_v0 = vmov 0.0   ;;  %vm567_vm0 = vmmov 0   ;;  %v568_v1 = vmov 0   ;;  %v478_v2 = vld [vmem:[#allocation5] sm:$0xff]  }
  0x28   :  { %447 = vmatprep.subr.bf16.mxu0 %v566_v0  ;;  %463 = vmatprep.mubr.msk.bf16.mxu0 %vm567_vm0, %v566_v0  ;;  %v479_v3 = vld [vmem:[#allocation5 + $0x8] sm:$0xff]   ;;  %v480_v4 = vld [vmem:[#allocation5 + $0x10] sm:$0xff]   ;;  %v53_v5 = vld [vmem:[#allocation2] sm:$0xff]  ;;  %vm229_vm1 = vcmask 1041409   ;;  %vm231_vm2 = vcmask 1042434   ;;  %vm233_vm3 = vcmask 1043459  }
  0x29   :  { %477 = vset.pattern.permute.xlu0 %v568_v1  ;;  %448 = vmatpush3.bf16.msra.mxu0 %v478_v2  ;;  %v54_v6 = vld [vmem:[#allocation2 + $0x8] sm:$0xff]  ;;  %v55_v7 = vld [vmem:[#allocation2 + $0x10] sm:$0xff]  ;;  %v56_v8 = vld [vmem:[#allocation2 + $0x18] sm:$0xff]  ;;  %v69_v11 = vrot.slane %v53_v5, 4  ;;  %vm235_vm4 = vcmask 1044484   ;;  %vm237_vm5 = vcmask 1045509  }
  0x2a   :  { %449 = vmatprep.subr.bf16.mxu0 %v566_v0  ;;  %v57_v9 = vld [vmem:[#allocation2 + $0x20] sm:$0xff]  ;;  %v58_v10 = vld [vmem:[#allocation2 + $0x28] sm:$0xff]  ;;  %v75_v12 = vrot.slane %v54_v6, 4  ;;  %v81_v13 = vrot.slane %v55_v7, 4  ;;  %v481_v14 = vld [vmem:[#allocation5 + $0x18] sm:$0xff]   ;;  %v87_v17 = vrot.slane %v56_v8, 4 }
  0x2b   :  { %v59_v15 = vld [vmem:[#allocation2 + $0x30] sm:$0xff]  ;;  %v60_v16 = vld [vmem:[#allocation2 + $0x38] sm:$0xff]  ;;  %v93_v18 = vrot.slane %v57_v9, 4  ;;  %v99_v19 = vrot.slane %v58_v10, 4  ;;  %v70_v20 = vadd.f32 %v69_v11, %v53_v5  ;;  %v341_v32 = vld [vmem:[%s720_s1] sm:$0xff]  ;;  %vm239_vm6 = vcmask 1046534  }
  0x2c   :  { %v76_v21 = vadd.f32 %v75_v12, %v54_v6  ;;  %v82_v22 = vadd.f32 %v81_v13, %v55_v7  ;;  %v105_v23 = vrot.slane %v59_v15, 4  ;;  %v88_v24 = vadd.f32 %v87_v17, %v56_v8  ;;  %v482_v33 = vld [vmem:[#allocation5 + $0x20] sm:$0xff]   ;;  %345 = vperm.xlu0 %477, %v341_v32   ;;  %v342_v42 = vld [vmem:[%s720_s1 + $0x8] sm:$0xff]  ;;  %v63_v54 = vld [vmem:[#allocation2 + $0x50] sm:$0xff]  ;;  %s569_s9 = smov [#allocation7]  }
  0x2d   :  { %450 = vmatpush3.bf16.msra.mxu0 %v479_v3  ;;  %v94_v25 = vadd.f32 %v93_v18, %v57_v9  ;;  %v100_v26 = vadd.f32 %v99_v19, %v58_v10  ;;  %v111_v27 = vrot.slane %v60_v16, 4  ;;  %v71_v28 = vrot.slane %v70_v20, 2  ;;  %v483_v47 = vld [vmem:[#allocation5 + $0x28] sm:$0xff]   ;;  %v61_v52 = vld [vmem:[#allocation2 + $0x40] sm:$0xff]  ;;  %v64_v57 = vld [vmem:[#allocation2 + $0x58] sm:$0xff]  ;;  %s414_s10 = sshll.u32 %s569_s9, 4  ;;  %s415_s10 = int_to_ptr.vmem [resolvable:$true] %s414_s10 }
  0x2e   :  { %451 = vmatprep.subr.bf16.mxu0 %v566_v0  ;;  %v77_v29 = vrot.slane %v76_v21, 2  ;;  %v83_v30 = vrot.slane %v82_v22, 2  ;;  %v106_v31 = vadd.f32 %v105_v23, %v59_v15  ;;  %v89_v34 = vrot.slane %v88_v24, 2  ;;  %v62_v53 = vld [vmem:[#allocation2 + $0x48] sm:$0xff]  ;;  %v65_v58 = vld [vmem:[#allocation2 + $0x60] sm:$0xff]  ;;  %v67_v62 = vld [vmem:[#allocation2 + $0x70] sm:$0xff]  ;;  %p537_p3 = scmp.lt.s32.totalorder %s415_s10, %s415_s10 }
  0x2f   :  { %v95_v35 = vrot.slane %v94_v25, 2  ;;  %v101_v36 = vrot.slane %v100_v26, 2  ;;  %v112_v37 = vadd.f32 %v111_v27, %v60_v16  ;;  %v72_v38 = vadd.f32 %v71_v28, %v70_v20  ;;  %v66_v59 = vld [vmem:[#allocation2 + $0x68] sm:$0xff]  ;;  %v484_v9 = vld [vmem:[#allocation5 + $0x30] sm:$0xff]   ;;  %s532_s11 = scalar_lea.vmem %s415_s10, 256 }
  0x30   :  { %v78_v39 = vadd.f32 %v77_v29, %v76_v21  ;;  %v84_v40 = vadd.f32 %v83_v30, %v82_v22  ;;  %v107_v41 = vrot.slane %v106_v31, 2  ;;  %v90_v43 = vadd.f32 %v89_v34, %v88_v24  ;;  %350 = vperm.xlu0 %477, %v342_v42   ;;  %p533_p2 = scmp.ne.s32.totalorder %s415_s10, %s532_s11  ;;  %p538_p4 = scmp.lt.s32.totalorder %s532_s11, %s532_s11 }
  0x31   :  { %452 = vmatpush3.bf16.msra.mxu0 %v480_v4  ;;  %v644_v44 = vadd.f32 %v95_v35, %v94_v25  ;;  %v646_v45 = vadd.f32 %v101_v36, %v100_v26  ;;  %v113_v46 = vrot.slane %v112_v37, 2  ;;  %v73_v48 = vrot.slane %v72_v38, 1  ;;  %v68_v4 = vld [vmem:[#allocation2 + $0x78] sm:$0xff] }
  0x32   :  { %453 = vmatprep.subr.bf16.mxu0 %v566_v0  ;;  %v79_v49 = vrot.slane %v78_v39, 1  ;;  %v85_v50 = vrot.slane %v84_v40, 1  ;;  %v648_v51 = vadd.f32 %v107_v41, %v106_v31  ;;  %v91_v55 = vrot.slane %v90_v43, 1  ;;  %v485_v26 = vld [vmem:[#allocation5 + $0x38] sm:$0xff]   ;;  %p539_p5 = por %p538_p4, %p537_p3 }
  0x33   :  { %v650_v56 = vadd.f32 %v113_v46, %v112_v37  ;;  %v97_v60 = vrot.slane %v644_v44, 1  ;;  %v103_v61 = vrot.slane %v646_v45, 1  ;;  %v655_v63 = vadd.f32 %v73_v48, %v72_v38 }
  0x34   :  { %v657_v1 = vadd.f32 %v79_v49, %v78_v39  ;;  %v659_v2 = vadd.f32 %v85_v50, %v84_v40  ;;  %v109_v3 = vrot.slane %v648_v51, 1  ;;  %v662_v5 = vadd.f32 %v91_v55, %v90_v43  ;;  %p540_p6 = pnand %p539_p5, %p533_p2 }
  0x35   :  { %454 = vmatpush3.bf16.msra.mxu0 %v481_v14  ;;  %v117_v6 = vrot.slane %v61_v52, 4  ;;  %v123_v7 = vrot.slane %v62_v53, 4  ;;  %v129_v8 = vrot.slane %v63_v54, 4  ;;  %v115_v10 = vrot.slane %v650_v56, 1 }
  0x36   :  { %455 = vmatprep.subr.bf16.mxu0 %v566_v0  ;;  %v135_v11 = vrot.slane %v64_v57, 4  ;;  %v141_v12 = vrot.slane %v65_v58, 4  ;;  %v147_v13 = vrot.slane %v66_v59, 4  ;;  %v153_v17 = vrot.slane %v67_v62, 4 }
  0x37   :  { %v118_v14 = vadd.f32 %v117_v6, %v61_v52  ;;  %v124_v15 = vadd.f32 %v123_v7, %v62_v53  ;;  %v130_v16 = vadd.f32 %v129_v8, %v63_v54  ;;  %v159_v21 = vrot.slane %v68_v4, 4 }
  0x38   :  { %v136_v18 = vadd.f32 %v135_v11, %v64_v57  ;;  %v142_v19 = vadd.f32 %v141_v12, %v65_v58  ;;  %v148_v20 = vadd.f32 %v147_v13, %v66_v59  ;;  %v154_v25 = vadd.f32 %v153_v17, %v67_v62 }
  0x39   :  { %456 = vmatpush3.bf16.msra.mxu0 %v482_v33  ;;  %v119_v22 = vrot.slane %v118_v14, 2  ;;  %v125_v23 = vrot.slane %v124_v15, 2  ;;  %v131_v24 = vrot.slane %v130_v16, 2  ;;  %v160_v30 = vadd.f32 %v159_v21, %v68_v4 }
  0x3a   :  { %457 = vmatprep.subr.bf16.mxu0 %v566_v0  ;;  %v137_v27 = vrot.slane %v136_v18, 2  ;;  %v143_v28 = vrot.slane %v142_v19, 2  ;;  %v149_v29 = vrot.slane %v148_v20, 2  ;;  %v155_v34 = vrot.slane %v154_v25, 2 }
  0x3b   :  { %v120_v31 = vadd.f32 %v119_v22, %v118_v14  ;;  %v126_v32 = vadd.f32 %v125_v23, %v124_v15  ;;  %v132_v33 = vadd.f32 %v131_v24, %v130_v16  ;;  %v161_v38 = vrot.slane %v160_v30, 2 }
  0x3c   :  { %v138_v35 = vadd.f32 %v137_v27, %v136_v18  ;;  %v144_v36 = vadd.f32 %v143_v28, %v142_v19  ;;  %v150_v37 = vadd.f32 %v149_v29, %v148_v20  ;;  %v156_v42 = vadd.f32 %v155_v34, %v154_v25 }
  0x3d   :  { %458 = vmatpush3.bf16.msra.mxu0 %v483_v47  ;;  %v121_v39 = vrot.slane %v120_v31, 1  ;;  %v127_v40 = vrot.slane %v126_v32, 1  ;;  %v133_v41 = vrot.slane %v132_v33, 1  ;;  %v162_v48 = vadd.f32 %v161_v38, %v160_v30 }
  0x3e   :  { %459 = vmatprep.subr.bf16.mxu0 %v566_v0  ;;  %v139_v43 = vrot.slane %v138_v35, 1  ;;  %v145_v46 = vrot.slane %v144_v36, 1  ;;  %v151_v47 = vrot.slane %v150_v37, 1  ;;  %v157_v52 = vrot.slane %v156_v42, 1 }
  0x3f   :  { %v122_v49 = vadd.f32 %v121_v39, %v120_v31  ;;  %v128_v50 = vadd.f32 %v127_v40, %v126_v32  ;;  %v134_v53 = vadd.f32 %v133_v41, %v132_v33  ;;  %v163_v57 = vrot.slane %v162_v48, 1 }
  0x40   :  { %v140_v54 = vadd.f32 %v139_v43, %v138_v35  ;;  %v146_v55 = vadd.f32 %v145_v46, %v144_v36  ;;  %v104_v58 = vadd.f32 %v103_v61, %v646_v45  ;;  %v152_v59 = vadd.f32 %v151_v47, %v150_v37 }
  0x41   :  { %460 = vmatpush3.bf16.msra.mxu0 %v484_v9  ;;  %v165_v62 = vpack.c.bf16 %v655_v63, %v655_v63  ;;  %v116_v4 = vadd.f32 %v115_v10, %v650_v56  ;;  %v158_v6 = vadd.f32 %v157_v52, %v156_v42  ;;  %v167_v7 = vpack.c.bf16 %v659_v2, %v659_v2 }
  0x42   :  { %461 = vmatprep.subr.bf16.mxu0 %v566_v0  ;;  %v98_v0 = vadd.f32 %v97_v60, %v644_v44  ;;  %v166_v44 = vpack.c.bf16 %v657_v1, %v657_v1  ;;  %v110_v60 = vadd.f32 %v109_v3, %v648_v51  ;;  %v164_v45 = vadd.f32 %v163_v57, %v162_v48 }
  0x43   :  { %v168_v61 = vpack.c.bf16 %v662_v5, %v662_v5  ;;  %v173_v63 = vpack.c.bf16 %v122_v49, %v122_v49  ;;  %v174_v8 = vpack.c.bf16 %v128_v50, %v128_v50  ;;  %v175_v9 = vpack.c.bf16 %v134_v53, %v134_v53  ;;  %v435_v50 = vld [vmem:[%s722_s3] ss:$0 sm:$0xff] }
  0x44   :  { %v169_v1 = vpack.c.bf16 %v98_v0, %v98_v0  ;;  %v176_v11 = vpack.c.bf16 %v140_v54, %v140_v54  ;;  %v177_v12 = vpack.c.bf16 %v146_v55, %v146_v55  ;;  %v170_v13 = vpack.c.bf16 %v104_v58, %v104_v58 }
  0x45   :  { %462 = vmatpush3.bf16.msra.mxu0 %v485_v26  ;;  %v178_v51 = vpack.c.bf16 %v152_v59, %v152_v59  ;;  %v213_v3 = vunpack.c.l.b16 %v165_v62  ;;  %v214_v56 = vunpack.c.l.b16 %v166_v44  ;;  %v171_v10 = vpack.c.bf16 %v110_v60, %v110_v60 }
  0x46   :  { %v172_v14 = vpack.c.bf16 %v116_v4, %v116_v4  ;;  %v179_v15 = vpack.c.bf16 %v158_v6, %v158_v6  ;;  %v215_v2 = vunpack.c.l.b16 %v167_v7  ;;  %v180_v16 = vpack.c.bf16 %v164_v45, %v164_v45 }
  0x47   :  { %v216_v17 = vunpack.c.l.b16 %v168_v61  ;;  %v221_v18 = vunpack.c.l.b16 %v173_v63  ;;  %v222_v19 = vunpack.c.l.b16 %v174_v8  ;;  %v217_v5 = vunpack.c.l.b16 %v169_v1 }
  0x48   :  { %v223_v20 = vunpack.c.l.b16 %v175_v9  ;;  %v224_v21 = vunpack.c.l.b16 %v176_v11  ;;  %v225_v22 = vunpack.c.l.b16 %v177_v12  ;;  %v218_v23 = vunpack.c.l.b16 %v170_v13 }
  0x49   :  { %v226_v24 = vunpack.c.l.b16 %v178_v51  ;;  %v230_v25 = vsel %vm229_vm1, %v214_v56, %v213_v3  ;;  %v243_v26 = vsel %vm229_vm1, %v222_v19, %v221_v18  ;;  %v219_v27 = vunpack.c.l.b16 %v171_v10 }
  0x4a   :  { %v227_v28 = vunpack.c.l.b16 %v179_v15  ;;  %v232_v29 = vsel %vm231_vm2, %v215_v2, %v230_v25  ;;  %v244_v30 = vsel %vm231_vm2, %v223_v20, %v243_v26  ;;  %v220_v31 = vunpack.c.l.b16 %v172_v14  ;;  %v436_v14 = vld [vmem:[%s723_s4] ss:$0 sm:$0xff] }
  0x4b   :  { %v228_v32 = vunpack.c.l.b16 %v180_v16  ;;  %v234_v33 = vsel %vm233_vm3, %v216_v17, %v232_v29  ;;  %v245_v34 = vsel %vm233_vm3, %v224_v21, %v244_v30  ;;  %vm241_vm7 = vcmask 1047559   ;;  %v437_v17 = vld [vmem:[%s724_s5] ss:$0 sm:$0xff] }
  0x4c   :  { %v236_v35 = vsel %vm235_vm4, %v217_v5, %v234_v33  ;;  %v246_v36 = vsel %vm235_vm4, %v225_v22, %v245_v34 }
  0x4d   :  { %v238_v37 = vsel %vm237_vm5, %v218_v23, %v236_v35  ;;  %v247_v38 = vsel %vm237_vm5, %v226_v24, %v246_v36 }
  0x4e   :  { %v240_v39 = vsel %vm239_vm6, %v219_v27, %v238_v37  ;;  %v248_v40 = vsel %vm239_vm6, %v227_v28, %v247_v38 }
  0x4f   :  { %v242_v41 = vsel %vm241_vm7, %v220_v31, %v240_v39  ;;  %v249_v42 = vsel %vm241_vm7, %v228_v32, %v248_v40 }
  0x50   :  { %v250_v43 = vpack.c.b16 %v249_v42, %v242_v41 }
  0x52   :  { %464 = vmatmul.mubr.bf16.vlgmr.msra.gmra.mrb[0].mxu0 %v250_v43 }
  0xab   :  { %v346_v46 = vpop.permute.xlu0 %345 }
  0xaf   :  { %v351_v49 = vpop.permute.xlu0 %350 }
 0x125   :  { %v334_v47 = vpop.f32.mrb[0].mxu0 }
 0x126   :  { %v353_v48 = vmul.f32 %v346_v46, %v334_v47  ;;  %v465_v0 = vpop.f32.mrb[1].mxu0 }
 0x127   :  { %v337_v52 = vpop.f32.mrb[2].mxu0 }
 0x128   :  { %v354_v53 = vmul.f32 %v351_v49, %v337_v52  ;;  %v466_v54 = vpop.f32.mrb[3].mxu0  ;;  %v362_v55 = vadd.f32 %v435_v50, %v353_v48 }
 0x12a   :  { %v363_v57 = vadd.f32 %v435_v50, %v354_v53 }
 0x12c   :  { %v364_v58 = vadd.f32 %v363_v57, %v362_v55 }
 0x12e   :  { %v365_v59 = vrot.slane %v364_v58, 4 }
 0x130   :  { %v366_v62 = vadd.f32 %v365_v59, %v364_v58 }
 0x132   :  { %v367_v44 = vrot.slane %v366_v62, 2 }
 0x134   :  { %v368_v60 = vadd.f32 %v367_v44, %v366_v62 }
 0x136   :  { %v369_v4 = vrot.slane %v368_v60, 1 }
 0x138   :  { %v370_v6 = vadd.f32 %v369_v4, %v368_v60 }
 0x13a   :  { %v372_v7 = vmul.f32 0.0625, %v370_v6 }
 0x13c   :  { %v373_v45 = vsub.f32 %v362_v55, %v372_v7  ;;  %v374_v61 = vsub.f32 %v363_v57, %v372_v7 }
 0x13e   :  { %v375_v63 = vmul.f32 %v373_v45, %v373_v45  ;;  %v376_v8 = vmul.f32 %v374_v61, %v374_v61  ;;  %v392_v15 = vmul.f32 %v436_v14, %v373_v45  ;;  %v393_v2 = vmul.f32 %v436_v14, %v374_v61 }
 0x140   :  { %v377_v1 = vadd.f32 %v376_v8, %v375_v63 }
 0x142   :  { %v378_v9 = vrot.slane %v377_v1, 4 }
 0x144   :  { %v379_v11 = vadd.f32 %v378_v9, %v377_v1 }
 0x146   :  { %v380_v12 = vrot.slane %v379_v11, 2 }
 0x148   :  { %v381_v13 = vadd.f32 %v380_v12, %v379_v11 }
 0x14a   :  { %v382_v51 = vrot.slane %v381_v13, 1 }
 0x14c   :  { %v383_v3 = vadd.f32 %v382_v51, %v381_v13 }
 0x14e   :  { %v384_v56 = vmul.f32 0.0625, %v383_v3 }
 0x150   :  { %v394_v10 = vadd.f32 1e-05, %v384_v56 }
 0x152   :  { %486 = vrsqrt.f32 %v394_v10 }
 0x15c   :  { %v487_v16 = vpop.eup %486 }
 0x15d   :  { %v396_v18 = vmul.f32 %v487_v16, %v392_v15  ;;  %v397_v19 = vmul.f32 %v487_v16, %v393_v2 }
 0x15f   :  { %v405_v5 = vadd.f32 %v437_v17, %v396_v18  ;;  %v406_v20 = vadd.f32 %v437_v17, %v397_v19 }
 0x161   :  { %407 = vst [vmem:[#allocation7] sm:$0xff] %v405_v5  ;;  %408 = vst [vmem:[#allocation7 + $0x8] sm:$0xff] %v406_v20 }
 0x162   :  { %543 = shalt.err (!%p540_p6)
}
 0x163   :  { %s544_s5 = scalar_lea.hbm %s725_s6, 256 }
 0x164   :  { %p545_p7 = scmp.ne.s32.totalorder %s725_s6, %s544_s5  ;;  %p548_p8 = scmp.lt.u32.totalorder %s544_s5, %s725_s6 }
 0x166   :  { %p550_p9 = pnand %p548_p8, %p545_p7 }
 0x168   :  { %553 = shalt.err (!%p550_p9)
}
 0x169   :  { %420 = dma.vmem_to_hbm [thread:$0]  %s415_s10, 256, %s725_s6, [#allocation4], %s561_s7, %s561_s7, %s562_s8  }
 0x16a   :  { %558 = dma.done.wait [#allocation4], 256  }
 0x16b   :  { %559 = vsyncadd [#allocation4], 4294967040 }
 0x16c   :  { %424 = vsyncpa [#allocation3], 1 }
 0x16d   :  { %425 = vsyncpa [#allocation6], 1 }
 0x16e   :  { %426 = vsyncpa [#allocation4], 1 }

</bundles_post_ra>
